<compile_context>
chip_gen: v7x
topology: tpu7x:2x2x1
jax: 0.10.0
libtpu: 0.0.40
codegen_flags: <defaults>
</compile_context>

<pallas_src>
import jax
import jax.numpy as jnp
from jax import lax
from jax.experimental import pallas as pl
from jax.experimental.pallas import tpu as pltpu

TB = 128  # batch rows per grid step (keeps output blocks lane-dense: 2 x 128)


def _bpr_kernel(idx_ref, user_t_ref, item_t_ref, out_ref):
    """One grid step = TB batch rows.

    idx_ref    : (3, TB) int32 block   rows = [user, item_i, item_j] indices
    user_t_ref : (F, user_num)  VMEM-resident (same block every step)
    item_t_ref : (F, item_num)  VMEM-resident (passed once, used for i and j)
    out_ref    : (2, TB) f32 block     row 0 = prediction_i, row 1 = prediction_j
    """
    idx = idx_ref[...]                       # (3, TB) int32
    u_tab = user_t_ref[...].astype(jnp.float32)   # (F, nu)
    i_tab = item_t_ref[...].astype(jnp.float32)   # (F, ni)
    F, nu = u_tab.shape
    ni = i_tab.shape[1]
    f32 = jnp.float32

    # One-hot masks (V, TB): iota over sublanes compared against the index row
    # broadcast across sublanes.  Pure VPU work, all tiny.
    oh_u = (lax.broadcasted_iota(jnp.int32, (nu, TB), 0) == idx[0:1, :]).astype(f32)
    oh_i = (lax.broadcasted_iota(jnp.int32, (ni, TB), 0) == idx[1:2, :]).astype(f32)
    oh_j = (lax.broadcasted_iota(jnp.int32, (ni, TB), 0) == idx[2:3, :]).astype(f32)

    # MXU gathers, all native (M,K)@(K,N) orientation: (F,V)@(V,TB) -> (F,TB).
    u = jnp.dot(u_tab, oh_u, preferred_element_type=f32)    # (F, TB)
    ei = jnp.dot(i_tab, oh_i, preferred_element_type=f32)   # (F, TB)
    ej = jnp.dot(i_tab, oh_j, preferred_element_type=f32)   # (F, TB)

    # (user * item).sum(-1) as a (1,F)@(F,TB) MXU ones-reduction; result is a
    # lane-dense (1, TB) row stored straight into the fused (2, TB) output.
    ones_row = jnp.ones((1, F), f32)
    out_ref[0:1, :] = jnp.dot(ones_row, u * ei, preferred_element_type=f32)
    out_ref[1:2, :] = jnp.dot(ones_row, u * ej, preferred_element_type=f32)


def bpr_forward(embed_user, embed_item, user_idx, item_i_idx, item_j_idx):
    """Returns (prediction_i, prediction_j), each shaped (B,) float32."""
    B = user_idx.shape[0]
    nu, F = embed_user.shape
    ni = embed_item.shape[0]

    nb = pl.cdiv(B, TB)
    b_pad = nb * TB
    pad = b_pad - B

    # (3, b_pad) index matrix; padded tail columns gather row 0 (sliced off).
    idx = jnp.stack([user_idx, item_i_idx, item_j_idx]).astype(jnp.int32)
    idx = jnp.pad(idx, ((0, 0), (0, pad)))

    # One-time wrapper-side layout plumbing: tables transposed to (F, V) so the
    # kernel needs no in-kernel transposes and all matmuls are MXU-native.
    user_t = embed_user.T     # (F, nu)
    item_t = embed_item.T     # (F, ni)

    grid_spec = pltpu.PrefetchScalarGridSpec(
        num_scalar_prefetch=0,
        grid=(nb,),
        in_specs=[
            pl.BlockSpec((3, TB), lambda b: (0, b)),     # per-step index block
            pl.BlockSpec((F, nu), lambda b: (0, 0)),     # whole table, resident
            pl.BlockSpec((F, ni), lambda b: (0, 0)),     # whole table, resident
        ],
        out_specs=pl.BlockSpec((2, TB), lambda b: (0, b)),
    )

    preds = pl.pallas_call(
        _bpr_kernel,
        out_shape=jax.ShapeDtypeStruct((2, b_pad), jnp.float32),
        grid_spec=grid_spec,
        compiler_params=pltpu.CompilerParams(
            dimension_semantics=("parallel",)),
    )(idx, user_t, item_t)

    return preds[0, :B], preds[1, :B]


if __name__ == "__main__":
    user_num, item_num, factor_num = 32, 64, 128
    batch = 8

    key = jax.random.PRNGKey(0)
    k_u, k_i, k_uu, k_ii, k_jj = jax.random.split(key, 5)

    # nn.init.normal_(weight, std=0.01)
    embed_user = (0.01 * jax.random.normal(k_u, (user_num, factor_num))
                  ).astype(jnp.float32)
    embed_item = (0.01 * jax.random.normal(k_i, (item_num, factor_num))
                  ).astype(jnp.float32)

    user_idx = jax.random.randint(k_uu, (batch,), 0, user_num, dtype=jnp.int32)
    item_i_idx = jax.random.randint(k_ii, (batch,), 0, item_num, dtype=jnp.int32)
    item_j_idx = jax.random.randint(k_jj, (batch,), 0, item_num, dtype=jnp.int32)

    pred_i, pred_j = bpr_forward(embed_user, embed_item,
                                 user_idx, item_i_idx, item_j_idx)
    jax.block_until_ready((pred_i, pred_j))

    # pure-JAX reference (eval-mode dropout = identity)
    u_e = jnp.take(embed_user, user_idx, axis=0)
    i_e = jnp.take(embed_item, item_i_idx, axis=0)
    j_e = jnp.take(embed_item, item_j_idx, axis=0)
    ref_i = jnp.sum(u_e * i_e, axis=-1)
    ref_j = jnp.sum(u_e * j_e, axis=-1)

    assert jnp.allclose(pred_i, ref_i, atol=1e-5, rtol=1e-5), (pred_i, ref_i)
    assert jnp.allclose(pred_j, ref_j, atol=1e-5, rtol=1e-5), (pred_j, ref_j)

    print("KERNEL_OK")
</pallas_src>

<mosaic_0001>
module attributes {stable_mosaic.version = 11 : i64} {
  func.func @_bpr_kernel(%arg0: i32, %arg1: memref<3x128xi32, #tpu.memory_space<vmem>>, %arg2: memref<128x32xf32, #tpu.memory_space<vmem>>, %arg3: memref<128x64xf32, #tpu.memory_space<vmem>>, %arg4: memref<2x128xf32, #tpu.memory_space<vmem>>) attributes {dimension_semantics = [#tpu.dimension_semantics<parallel>], iteration_bounds = array<i64: 1>, scalar_prefetch = 0 : i64, scratch_operands = 0 : i64, tpu.core_type = #tpu.core_type<tc>, window_params = [{transform_indices = @transform_0, window_bounds = array<i64: 3, 128>}, {pipeline_mode = #tpu.pipeline_mode<synchronous>, transform_indices = @transform_1, window_bounds = array<i64: 128, 32>}, {pipeline_mode = #tpu.pipeline_mode<synchronous>, transform_indices = @transform_2, window_bounds = array<i64: 128, 64>}, {transform_indices = @transform_3, window_bounds = array<i64: 2, 128>}]} {
    %c0 = arith.constant 0 : index
    %c0_0 = arith.constant 0 : index
    %0 = vector.load %arg1[%c0, %c0_0] : memref<3x128xi32, #tpu.memory_space<vmem>>, vector<3x128xi32>
    %c0_1 = arith.constant 0 : index
    %c0_2 = arith.constant 0 : index
    %1 = vector.load %arg2[%c0_1, %c0_2] : memref<128x32xf32, #tpu.memory_space<vmem>>, vector<128x32xf32>
    %c0_3 = arith.constant 0 : index
    %c0_4 = arith.constant 0 : index
    %2 = vector.load %arg3[%c0_3, %c0_4] : memref<128x64xf32, #tpu.memory_space<vmem>>, vector<128x64xf32>
    %3 = tpu.iota {dimensions = array<i32: 0>} : vector<32x128xi32>
    %4 = vector.extract_strided_slice %0 {offsets = [0, 0], sizes = [1, 128], strides = [1, 1]} : vector<3x128xi32> to vector<1x128xi32>
    %5 = vector.broadcast %4 : vector<1x128xi32> to vector<32x128xi32>
    %6 = arith.cmpi eq, %3, %5 : vector<32x128xi32>
    %7 = arith.extui %6 : vector<32x128xi1> to vector<32x128xi32>
    %8 = arith.sitofp %7 : vector<32x128xi32> to vector<32x128xf32>
    %9 = tpu.iota {dimensions = array<i32: 0>} : vector<64x128xi32>
    %10 = vector.extract_strided_slice %0 {offsets = [1, 0], sizes = [1, 128], strides = [1, 1]} : vector<3x128xi32> to vector<1x128xi32>
    %11 = vector.broadcast %10 : vector<1x128xi32> to vector<64x128xi32>
    %12 = arith.cmpi eq, %9, %11 : vector<64x128xi32>
    %13 = arith.extui %12 : vector<64x128xi1> to vector<64x128xi32>
    %14 = arith.sitofp %13 : vector<64x128xi32> to vector<64x128xf32>
    %15 = tpu.iota {dimensions = array<i32: 0>} : vector<64x128xi32>
    %16 = vector.extract_strided_slice %0 {offsets = [2, 0], sizes = [1, 128], strides = [1, 1]} : vector<3x128xi32> to vector<1x128xi32>
    %17 = vector.broadcast %16 : vector<1x128xi32> to vector<64x128xi32>
    %18 = arith.cmpi eq, %15, %17 : vector<64x128xi32>
    %19 = arith.extui %18 : vector<64x128xi1> to vector<64x128xi32>
    %20 = arith.sitofp %19 : vector<64x128xi32> to vector<64x128xf32>
    %cst = arith.constant dense<0.000000e+00> : vector<128x128xf32>
    %21 = tpu.matmul %1, %8, %cst {dimension_numbers = #tpu.dot_dimension_numbers<[1], [0], [0], [1], [0, 0, 1, 1], [], []>} : vector<128x32xf32>, vector<32x128xf32>, vector<128x128xf32> -> vector<128x128xf32>
    %cst_5 = arith.constant dense<0.000000e+00> : vector<128x128xf32>
    %22 = tpu.matmul %2, %14, %cst_5 {dimension_numbers = #tpu.dot_dimension_numbers<[1], [0], [0], [1], [0, 0, 1, 1], [], []>} : vector<128x64xf32>, vector<64x128xf32>, vector<128x128xf32> -> vector<128x128xf32>
    %cst_6 = arith.constant dense<0.000000e+00> : vector<128x128xf32>
    %23 = tpu.matmul %2, %20, %cst_6 {dimension_numbers = #tpu.dot_dimension_numbers<[1], [0], [0], [1], [0, 0, 1, 1], [], []>} : vector<128x64xf32>, vector<64x128xf32>, vector<128x128xf32> -> vector<128x128xf32>
    %cst_7 = arith.constant 1.000000e+00 : f32
    %24 = vector.broadcast %cst_7 : f32 to vector<1x128xf32>
    %25 = arith.mulf %21, %22 : vector<128x128xf32>
    %cst_8 = arith.constant dense<0.000000e+00> : vector<1x128xf32>
    %26 = tpu.matmul %24, %25, %cst_8 {dimension_numbers = #tpu.dot_dimension_numbers<[1], [0], [0], [1], [0, 0, 1, 1], [], []>} : vector<1x128xf32>, vector<128x128xf32>, vector<1x128xf32> -> vector<1x128xf32>
    %c0_9 = arith.constant 0 : index
    %c0_10 = arith.constant 0 : index
    %27 = vector.load %arg4[%c0_9, %c0_10] : memref<2x128xf32, #tpu.memory_space<vmem>>, vector<1x128xf32>
    tpu.vector_store %arg4[%c0_9, %c0_10], %26 {strides = array<i32>} : memref<2x128xf32, #tpu.memory_space<vmem>>, vector<1x128xf32>,
    %28 = arith.mulf %21, %23 : vector<128x128xf32>
    %cst_11 = arith.constant dense<0.000000e+00> : vector<1x128xf32>
    %29 = tpu.matmul %24, %28, %cst_11 {dimension_numbers = #tpu.dot_dimension_numbers<[1], [0], [0], [1], [0, 0, 1, 1], [], []>} : vector<1x128xf32>, vector<128x128xf32>, vector<1x128xf32> -> vector<1x128xf32>
    %c1 = arith.constant 1 : index
    %c0_12 = arith.constant 0 : index
    %30 = vector.load %arg4[%c1, %c0_12] : memref<2x128xf32, #tpu.memory_space<vmem>>, vector<1x128xf32>
    tpu.vector_store %arg4[%c1, %c0_12], %29 {strides = array<i32>} : memref<2x128xf32, #tpu.memory_space<vmem>>, vector<1x128xf32>,
    return
  }
  func.func @transform_0(%arg0: i32) -> (i32, i32) {
    %c0_i32 = arith.constant 0 : i32
    %c0_i32_0 = arith.constant 0 : i32
    return %c0_i32, %arg0 : i32, i32
  }
  func.func @transform_1(%arg0: i32) -> (i32, i32) {
    %c0_i32 = arith.constant 0 : i32
    %c0_i32_0 = arith.constant 0 : i32
    %c0_i32_1 = arith.constant 0 : i32
    return %c0_i32, %c0_i32_0 : i32, i32
  }
  func.func @transform_2(%arg0: i32) -> (i32, i32) {
    %c0_i32 = arith.constant 0 : i32
    %c0_i32_0 = arith.constant 0 : i32
    %c0_i32_1 = arith.constant 0 : i32
    return %c0_i32, %c0_i32_0 : i32, i32
  }
  func.func @transform_3(%arg0: i32) -> (i32, i32) {
    %c0_i32 = arith.constant 0 : i32
    %c0_i32_0 = arith.constant 0 : i32
    return %c0_i32, %arg0 : i32, i32
  }
}

</mosaic_0001>

<bundles_post_ra>
// kernel: tpu_custom_call.1
= control target key start
LH: loop header
LB: loop body
LE: loop exit
PB: predicated region body
PF: predicated region fallthrough
CT: control target
= control target key end

     0   :  { %v48_v0 = vlaneseq  ;;  %vm129_vm0 = vcmask 261120   ;;  %v1344_v14 = vmov 1.0|1.0   ;;  %s1681_s0 = inlined_call_operand.vmem [shape: s32[3,128], index: 0, kind: input, shape index: {}]   ;;  %s1682_s1 = inlined_call_operand.vmem [shape: f32[128,32], index: 1, kind: input, shape index: {}]   ;;  %s1683_s2 = inlined_call_operand.vmem [shape: f32[128,64], index: 2, kind: input, shape index: {}]   ;;  %s1684_s3 = inlined_call_operand.hbm [shape: f32[2,128], index: 3, kind: output, shape index: {}]  }
   0x1   :  { %v16_v1 = vld [vmem:[%s1682_s1] sm:$0xff]  ;;  %v17_v19 = vld [vmem:[%s1682_s1 + $0x8] sm:$0xff]  ;;  %v18_v21 = vld [vmem:[%s1682_s1 + $0x10] sm:$0xff] }
   0x2   :  { %1048 = vmatprep.mubr.msk.f32.mxu0 %vm129_vm0, %v16_v1  ;;  %v24_v2 = vld [vmem:[%s1682_s1 + $0x40] sm:$0xff]  ;;  %v49_v3 = vshrl.u32 %v48_v0, 7  ;;  %v25_v20 = vld [vmem:[%s1682_s1 + $0x48] sm:$0xff]  ;;  %v26_v22 = vld [vmem:[%s1682_s1 + $0x50] sm:$0xff] }
   0x3   :  { %1060 = vmatprep.mubr.msk.f32.mxu1 %vm129_vm0, %v24_v2  ;;  %v15_v4 = vld [vmem:[%s1681_s0] sm:$0x7]  ;;  %v19_v27 = vld [vmem:[%s1682_s1 + $0x18] sm:$0xff] }
   0x4   :  { %v50_v5 = vadd.s32 8, %v49_v3  ;;  %v55_v6 = vsub.s32 0, %v49_v3  ;;  %v75_v7 = vsub.s32 1, %v49_v3  ;;  %v103_v8 = vsub.s32 2, %v49_v3  ;;  %v27_v28 = vld [vmem:[%s1682_s1 + $0x58] sm:$0xff] }
   0x5   :  { %v51_v9 = vadd.s32 16, %v49_v3  ;;  %v52_v10 = vadd.s32 24, %v49_v3  ;;  %v69_v17 = vadd.s32 32, %v49_v3  ;;  %v70_v18 = vadd.s32 40, %v49_v3 }
   0x6   :  { %v56_v11 = vrot.slane %v15_v4, %v55_v6  ;;  %v1381_v12 = vrot.slane %v15_v4, %v75_v7  ;;  %v1383_v13 = vrot.slane %v15_v4, %v103_v8  ;;  %v71_v25 = vadd.s32 48, %v49_v3 }
   0x7   :  { %v72_v26 = vadd.s32 56, %v49_v3 }
   0x8   :  { %vm57_vm1 = vcmp.eq.s32.totalorder %v49_v3, %v56_v11  ;;  %vm58_vm2 = vcmp.eq.s32.totalorder %v50_v5, %v56_v11  ;;  %vm59_vm3 = vcmp.eq.s32.totalorder %v51_v9, %v56_v11  ;;  %vm60_vm4 = vcmp.eq.s32.totalorder %v52_v10, %v56_v11 }
   0x9   :  { %vm1222_vm5 = vmpackc.low %vm58_vm2, %vm57_vm1  ;;  %vm77_vm6 = vcmp.eq.s32.totalorder %v49_v3, %v1381_v12  ;;  %vm78_vm7 = vcmp.eq.s32.totalorder %v50_v5, %v1381_v12  ;;  %vm105_vm9 = vcmp.eq.s32.totalorder %v49_v3, %v1383_v13  ;;  %vm106_vm10 = vcmp.eq.s32.totalorder %v50_v5, %v1383_v13 }
   0xa   :  { %1223 = vmatprep.subr.msk.bf16.mxu0 %vm1222_vm5, %v1344_v14  ;;  %1310 = vmatprep.subr.msk.bf16.mxu1 %vm1222_vm5, %v1344_v14  ;;  %vm1226_vm8 = vmpackc.low %vm60_vm4, %vm59_vm3  ;;  %vm79_vm13 = vcmp.eq.s32.totalorder %v51_v9, %v1381_v12  ;;  %vm80_vm14 = vcmp.eq.s32.totalorder %v52_v10, %v1381_v12  ;;  %vm107_vm15 = vcmp.eq.s32.totalorder %v51_v9, %v1383_v13 }
   0xb   :  { %1225 = vmatpush3.bf16.msk.msra.mxu0 %vm1222_vm5, %v1344_v14  ;;  %1312 = vmatpush3.bf16.msk.msra.mxu1 %vm1222_vm5, %v1344_v14  ;;  %vm1395_vm11 = vmpackc.low %vm78_vm7, %vm77_vm6  ;;  %vm108_vm1 = vcmp.eq.s32.totalorder %v52_v10, %v1383_v13  ;;  %vm81_vm4 = vcmp.eq.s32.totalorder %v69_v17, %v1381_v12  ;;  %vm82_vm5 = vcmp.eq.s32.totalorder %v70_v18, %v1381_v12 }
   0xc   :  { %1227 = vmatprep.subr.msk.bf16.mxu0 %vm1226_vm8, %v1344_v14  ;;  %1311 = vmatprep.subr.msk.bf16.mxu1 %vm1226_vm8, %v1344_v14  ;;  %vm1399_vm12 = vmpackc.low %vm106_vm10, %vm105_vm9  ;;  %vm109_vm6 = vcmp.eq.s32.totalorder %v69_v17, %v1383_v13  ;;  %vm110_vm7 = vcmp.eq.s32.totalorder %v70_v18, %v1383_v13 }
   0xd   :  { %vm1427_vm2 = vmpackc.low %vm80_vm14, %vm79_vm13 }
   0xe   :  { %vm1433_vm3 = vmpackc.low %vm108_vm1, %vm107_vm15 }
   0xf   :  { %1229 = vmatpush3.bf16.msk.msra.mxu0 %vm1226_vm8, %v1344_v14  ;;  %1313 = vmatpush3.bf16.msk.msra.mxu1 %vm1226_vm8, %v1344_v14 }
  0x10   :  { %1231 = vmatprep.subr.msk.bf16.mxu1 %vm1395_vm11, %v1344_v14  ;;  %1247 = vmatprep.subr.msk.bf16.mxu0 %vm1399_vm12, %v1344_v14 }
  0x12   :  { %1049 = vmatmul.mubr.msk.f32.vlgmr.msra.gmra.mrb[0].mxu0 %vm129_vm0, %v17_v19  ;;  %1061 = vmatmul.mubr.msk.f32.vlgmr.msra.gmra.mrb[0].mxu1 %vm129_vm0, %v25_v20 }
  0x13   :  { %1233 = vmatpush3.bf16.msk.msra.mxu1 %vm1395_vm11, %v1344_v14  ;;  %1249 = vmatpush3.bf16.msk.msra.mxu0 %vm1399_vm12, %v1344_v14 }
  0x14   :  { %8 = vsyncpa [#allocation3], 0  ;;  %1051 = vmatprep.mubr.msk.f32.mxu0 %vm129_vm0, %v18_v21  ;;  %1063 = vmatprep.mubr.msk.f32.mxu1 %vm129_vm0, %v26_v22  ;;  %v20_v29 = vld [vmem:[%s1682_s1 + $0x20] sm:$0xff]  ;;  %vm83_vm10 = vcmp.eq.s32.totalorder %v71_v25, %v1381_v12  ;;  %vm84_vm11 = vcmp.eq.s32.totalorder %v72_v26, %v1381_v12  ;;  %v21_v33 = vld [vmem:[%s1682_s1 + $0x28] sm:$0xff]  ;;  %vm111_vm12 = vcmp.eq.s32.totalorder %v71_v25, %v1383_v13  ;;  %vm323_vm1 = vcmask 523264  }
  0x15   :  { %1235 = vmatprep.subr.msk.bf16.mxu1 %vm1427_vm2, %v1344_v14  ;;  %1251 = vmatprep.subr.msk.bf16.mxu0 %vm1433_vm3, %v1344_v14  ;;  %v28_v30 = vld [vmem:[%s1682_s1 + $0x60] sm:$0xff]  ;;  %vm1471_vm8 = vmpackc.low %vm82_vm5, %vm81_vm4  ;;  %v29_v34 = vld [vmem:[%s1682_s1 + $0x68] sm:$0xff]  ;;  %vm112_vm13 = vcmp.eq.s32.totalorder %v72_v26, %v1383_v13  ;;  %v1345_v56 = vmov 0.0|0.0   ;;  %v1347_v57 = vmov 0.0  }
  0x16   :  { %1052 = vmatmul.mubr.msk.f32.gmra.mrb[2].mxu0 %vm129_vm0, %v19_v27  ;;  %1064 = vmatmul.mubr.msk.f32.gmra.mrb[2].mxu1 %vm129_vm0, %v27_v28  ;;  %vm1477_vm9 = vmpackc.low %vm110_vm7, %vm109_vm6  ;;  %v22_v35 = vld [vmem:[%s1682_s1 + $0x30] sm:$0xff]  ;;  %v23_v38 = vld [vmem:[%s1682_s1 + $0x38] sm:$0xff] }
  0x17   :  { %1237 = vmatpush3.bf16.msk.msra.mxu1 %vm1427_vm2, %v1344_v14  ;;  %1253 = vmatpush3.bf16.msk.msra.mxu0 %vm1433_vm3, %v1344_v14  ;;  %v30_v36 = vld [vmem:[%s1682_s1 + $0x70] sm:$0xff]  ;;  %vm1511_vm14 = vmpackc.low %vm84_vm11, %vm83_vm10  ;;  %v31_v39 = vld [vmem:[%s1682_s1 + $0x78] sm:$0xff] }
  0x18   :  { %1054 = vmatprep.mubr.msk.f32.mxu0 %vm129_vm0, %v20_v29  ;;  %1066 = vmatprep.mubr.msk.f32.mxu1 %vm129_vm0, %v28_v30  ;;  %vm1258_vm15 = vmpackc.low %vm112_vm13, %vm111_vm12  ;;  %v32_v40 = vld [vmem:[%s1683_s2] sm:$0xff]  ;;  %v33_v41 = vld [vmem:[%s1683_s2 + $0x8] sm:$0xff] }
  0x19   :  { %1239 = vmatprep.subr.msk.bf16.mxu1 %vm1471_vm8, %v1344_v14  ;;  %1255 = vmatprep.subr.msk.bf16.mxu0 %vm1477_vm9, %v1344_v14  ;;  %v34_v42 = vld [vmem:[%s1683_s2 + $0x10] sm:$0xff]  ;;  %v35_v43 = vld [vmem:[%s1683_s2 + $0x18] sm:$0xff]  ;;  %v36_v44 = vld [vmem:[%s1683_s2 + $0x20] sm:$0xff] }
  0x1a   :  { %1055 = vmatmul.mubr.msk.f32.gmra.mrb[4].mxu0 %vm129_vm0, %v21_v33  ;;  %1067 = vmatmul.mubr.msk.f32.gmra.mrb[4].mxu1 %vm129_vm0, %v29_v34  ;;  %v37_v45 = vld [vmem:[%s1683_s2 + $0x28] sm:$0xff]  ;;  %v38_v46 = vld [vmem:[%s1683_s2 + $0x30] sm:$0xff]  ;;  %v39_v47 = vld [vmem:[%s1683_s2 + $0x38] sm:$0xff] }
  0x1b   :  { %1241 = vmatpush3.bf16.msk.msra.mxu1 %vm1471_vm8, %v1344_v14  ;;  %1257 = vmatpush3.bf16.msk.msra.mxu0 %vm1477_vm9, %v1344_v14  ;;  %v40_v48 = vld [vmem:[%s1683_s2 + $0x40] sm:$0xff]  ;;  %v41_v49 = vld [vmem:[%s1683_s2 + $0x48] sm:$0xff]  ;;  %v42_v50 = vld [vmem:[%s1683_s2 + $0x50] sm:$0xff] }
  0x1c   :  { %1057 = vmatprep.mubr.msk.f32.mxu0 %vm129_vm0, %v22_v35  ;;  %1069 = vmatprep.mubr.msk.f32.mxu1 %vm129_vm0, %v30_v36  ;;  %v43_v51 = vld [vmem:[%s1683_s2 + $0x58] sm:$0xff]  ;;  %v44_v52 = vld [vmem:[%s1683_s2 + $0x60] sm:$0xff]  ;;  %v45_v53 = vld [vmem:[%s1683_s2 + $0x68] sm:$0xff] }
  0x1d   :  { %1243 = vmatprep.subr.msk.bf16.mxu1 %vm1511_vm14, %v1344_v14  ;;  %1259 = vmatprep.subr.msk.bf16.mxu0 %vm1258_vm15, %v1344_v14  ;;  %v46_v54 = vld [vmem:[%s1683_s2 + $0x70] sm:$0xff]  ;;  %v47_v55 = vld [vmem:[%s1683_s2 + $0x78] sm:$0xff]  ;;  %s1349_s2 = smov [#allocation2]  }
  0x1e   :  { %1058 = vmatmul.mubr.msk.f32.gmra.mrb[6].mxu0 %vm129_vm0, %v23_v38  ;;  %1070 = vmatmul.mubr.msk.f32.gmra.mrb[6].mxu1 %vm129_vm0, %v31_v39  ;;  %vm1346_vm0 = vmmov 0   ;;  %s842_s19 = sshll.u32 %s1349_s2, 4  ;;  %s843_s19 = int_to_ptr.vmem [resolvable:$true] %s842_s19 }
  0x1f   :  { %1245 = vmatpush3.bf16.msk.msra.mxu1 %vm1511_vm14, %v1344_v14  ;;  %1261 = vmatpush3.bf16.msk.msra.mxu0 %vm1258_vm15, %v1344_v14  ;;  %s1320_s20 = scalar_lea.vmem %s843_s19, 32  ;;  %p1325_p1 = scmp.lt.s32.totalorder %s843_s19, %s843_s19 }
  0x20   :  { %1088 = vmatprep.mubr.msk.f32.mxu1 %vm323_vm1, %v32_v40  ;;  %1128 = vmatprep.mubr.msk.f32.mxu0 %vm323_vm1, %v32_v40  ;;  %p1321_p0 = scmp.ne.s32.totalorder %s843_s19, %s1320_s20  ;;  %p1326_p2 = scmp.lt.s32.totalorder %s1320_s20, %s1320_s20 }
  0x21   :  { %1262 = vmatprep.subr.bf16.mxu1 %v1345_v56  ;;  %1286 = vmatprep.subr.bf16.mxu0 %v1345_v56 }
  0x22   :  { %1089 = vmatmul.mubr.msk.f32.vlgmr.msra.gmra.mrb[8].mxu1 %vm323_vm1, %v33_v41  ;;  %1129 = vmatmul.mubr.msk.f32.vlgmr.msra.gmra.mrb[8].mxu0 %vm323_vm1, %v33_v41  ;;  %p1327_p3 = por %p1326_p2, %p1325_p1 }
  0x23   :  { %1091 = vmatprep.mubr.msk.f32.mxu1 %vm323_vm1, %v34_v42  ;;  %1131 = vmatprep.mubr.msk.f32.mxu0 %vm323_vm1, %v34_v42 }
  0x24   :  { %p1328_p4 = pnand %p1327_p3, %p1321_p0 }
  0x26   :  { %1092 = vmatmul.mubr.msk.f32.gmra.mrb[10].mxu1 %vm323_vm1, %v35_v43  ;;  %1132 = vmatmul.mubr.msk.f32.gmra.mrb[10].mxu0 %vm323_vm1, %v35_v43 }
  0x27   :  { %1094 = vmatprep.mubr.msk.f32.mxu1 %vm323_vm1, %v36_v44  ;;  %1134 = vmatprep.mubr.msk.f32.mxu0 %vm323_vm1, %v36_v44 }
  0x2a   :  { %1095 = vmatmul.mubr.msk.f32.gmra.mrb[12].mxu1 %vm323_vm1, %v37_v45  ;;  %1135 = vmatmul.mubr.msk.f32.gmra.mrb[12].mxu0 %vm323_vm1, %v37_v45 }
  0x2b   :  { %1097 = vmatprep.mubr.msk.f32.mxu1 %vm323_vm1, %v38_v46  ;;  %1137 = vmatprep.mubr.msk.f32.mxu0 %vm323_vm1, %v38_v46 }
  0x2e   :  { %1098 = vmatmul.mubr.msk.f32.gmra.mrb[14].mxu1 %vm323_vm1, %v39_v47  ;;  %1138 = vmatmul.mubr.msk.f32.gmra.mrb[14].mxu0 %vm323_vm1, %v39_v47 }
  0x2f   :  { %1100 = vmatprep.mubr.msk.f32.mxu1 %vm323_vm1, %v40_v48  ;;  %1140 = vmatprep.mubr.msk.f32.mxu0 %vm323_vm1, %v40_v48 }
  0x32   :  { %1101 = vmatmul.mubr.msk.f32.gmra.mrb[16].mxu1 %vm323_vm1, %v41_v49  ;;  %1141 = vmatmul.mubr.msk.f32.gmra.mrb[16].mxu0 %vm323_vm1, %v41_v49 }
  0x33   :  { %1103 = vmatprep.mubr.msk.f32.mxu1 %vm323_vm1, %v42_v50  ;;  %1143 = vmatprep.mubr.msk.f32.mxu0 %vm323_vm1, %v42_v50 }
  0x36   :  { %1104 = vmatmul.mubr.msk.f32.gmra.mrb[18].mxu1 %vm323_vm1, %v43_v51  ;;  %1144 = vmatmul.mubr.msk.f32.gmra.mrb[18].mxu0 %vm323_vm1, %v43_v51 }
  0x37   :  { %1106 = vmatprep.mubr.msk.f32.mxu1 %vm323_vm1, %v44_v52  ;;  %1146 = vmatprep.mubr.msk.f32.mxu0 %vm323_vm1, %v44_v52 }
  0x3a   :  { %1107 = vmatmul.mubr.msk.f32.gmra.mrb[20].mxu1 %vm323_vm1, %v45_v53  ;;  %1147 = vmatmul.mubr.msk.f32.gmra.mrb[20].mxu0 %vm323_vm1, %v45_v53 }
  0x3b   :  { %1109 = vmatprep.mubr.msk.f32.mxu1 %vm323_vm1, %v46_v54  ;;  %1149 = vmatprep.mubr.msk.f32.mxu0 %vm323_vm1, %v46_v54 }
  0x3e   :  { %1110 = vmatmul.mubr.msk.f32.gmra.mrb[22].mxu1 %vm323_vm1, %v47_v55  ;;  %1150 = vmatmul.mubr.msk.f32.gmra.mrb[22].mxu0 %vm323_vm1, %v47_v55 }
  0x3f   :  { %1184 = vmatprep.mubr.msk.f32.mxu1 %vm1346_vm0, %v1347_v57  ;;  %1219 = vmatprep.mubr.msk.f32.mxu0 %vm1346_vm0, %v1347_v57 }
  0xe5   :  { %v1050_v58 = vpop.f32.mrb[0].mxu0  ;;  %v1623_v59 = vpop.f32.mrb[0].mxu1 }
  0xe6   :  { %v244_v60 = vpop.f32.mrb[1].mxu0  ;;  %v1625_v61 = vpop.f32.mrb[1].mxu1 }
  0xe9   :  { %v1053_v62 = vpop.f32.mrb[2].mxu0  ;;  %v1627_v63 = vpop.f32.mrb[2].mxu1 }
  0xea   :  { %v254_v0 = vpop.f32.mrb[3].mxu0  ;;  %v1629_v1 = vpop.f32.mrb[3].mxu1 }
  0xed   :  { %v1056_v2 = vpop.f32.mrb[4].mxu0  ;;  %v1631_v3 = vpop.f32.mrb[4].mxu1 }
  0xee   :  { %v264_v4 = vpop.f32.mrb[5].mxu0  ;;  %v1633_v5 = vpop.f32.mrb[5].mxu1 }
  0xf1   :  { %v1059_v6 = vpop.f32.mrb[6].mxu0  ;;  %v1635_v7 = vpop.f32.mrb[6].mxu1 }
  0xf2   :  { %v274_v8 = vpop.f32.mrb[7].mxu0  ;;  %v1637_v9 = vpop.f32.mrb[7].mxu1 }
  0xf5   :  { %v1090_v10 = vpop.f32.mrb[8].mxu1  ;;  %v1130_v11 = vpop.f32.mrb[8].mxu0 }
  0xf6   :  { %v663_v12 = vmul.f32 %v1090_v10, %v1050_v58  ;;  %v750_v13 = vmul.f32 %v1130_v11, %v1050_v58  ;;  %v438_v14 = vpop.f32.mrb[9].mxu1  ;;  %v583_v15 = vpop.f32.mrb[9].mxu0 }
  0xf7   :  { %v662_v16 = vmul.f32 %v438_v14, %v244_v60  ;;  %v749_v17 = vmul.f32 %v583_v15, %v244_v60 }
  0xf9   :  { %v1263_v18 = vpack.c.bf16 %v663_v12, %v662_v16  ;;  %v1287_v19 = vpack.c.bf16 %v750_v13, %v749_v17  ;;  %v1093_v20 = vpop.f32.mrb[10].mxu1  ;;  %v1133_v21 = vpop.f32.mrb[10].mxu0 }
  0xfa   :  { %v665_v22 = vmul.f32 %v1093_v20, %v1053_v62  ;;  %v752_v23 = vmul.f32 %v1133_v21, %v1053_v62  ;;  %v448_v24 = vpop.f32.mrb[11].mxu1  ;;  %v593_v25 = vpop.f32.mrb[11].mxu0 }
  0xfb   :  { %v664_v26 = vmul.f32 %v448_v24, %v254_v0  ;;  %v751_v27 = vmul.f32 %v593_v25, %v254_v0  ;;  %1264 = vmatpush3.bf16.msra.mxu1 %v1263_v18  ;;  %1288 = vmatpush3.bf16.msra.mxu0 %v1287_v19 }
  0xfc   :  { %1265 = vmatprep.subr.bf16.mxu1 %v1345_v56  ;;  %1289 = vmatprep.subr.bf16.mxu0 %v1345_v56 }
  0xfd   :  { %v1266_v28 = vpack.c.bf16 %v665_v22, %v664_v26  ;;  %v1290_v29 = vpack.c.bf16 %v752_v23, %v751_v27  ;;  %v1096_v30 = vpop.f32.mrb[12].mxu1  ;;  %v1136_v31 = vpop.f32.mrb[12].mxu0 }
  0xfe   :  { %v667_v32 = vmul.f32 %v1096_v30, %v1056_v2  ;;  %v754_v33 = vmul.f32 %v1136_v31, %v1056_v2  ;;  %v458_v34 = vpop.f32.mrb[13].mxu1  ;;  %v603_v35 = vpop.f32.mrb[13].mxu0 }
  0xff   :  { %v666_v36 = vmul.f32 %v458_v34, %v264_v4  ;;  %v753_v37 = vmul.f32 %v603_v35, %v264_v4  ;;  %1267 = vmatpush3.bf16.msra.mxu1 %v1266_v28  ;;  %1291 = vmatpush3.bf16.msra.mxu0 %v1290_v29  ;;  %v1348_v29 = vmov 1.0  }
 0x100   :  { %1268 = vmatprep.subr.bf16.mxu1 %v1345_v56  ;;  %1292 = vmatprep.subr.bf16.mxu0 %v1345_v56 }
 0x101   :  { %v1269_v38 = vpack.c.bf16 %v667_v32, %v666_v36  ;;  %v1293_v39 = vpack.c.bf16 %v754_v33, %v753_v37  ;;  %v1099_v40 = vpop.f32.mrb[14].mxu1  ;;  %v1139_v41 = vpop.f32.mrb[14].mxu0 }
 0x102   :  { %v669_v42 = vmul.f32 %v1099_v40, %v1059_v6  ;;  %v756_v43 = vmul.f32 %v1139_v41, %v1059_v6  ;;  %v468_v44 = vpop.f32.mrb[15].mxu1  ;;  %v613_v45 = vpop.f32.mrb[15].mxu0 }
 0x103   :  { %v668_v46 = vmul.f32 %v468_v44, %v274_v8  ;;  %v755_v47 = vmul.f32 %v613_v45, %v274_v8  ;;  %1270 = vmatpush3.bf16.msra.mxu1 %v1269_v38  ;;  %1294 = vmatpush3.bf16.msra.mxu0 %v1293_v39 }
 0x104   :  { %1271 = vmatprep.subr.bf16.mxu1 %v1345_v56  ;;  %1295 = vmatprep.subr.bf16.mxu0 %v1345_v56 }
 0x105   :  { %v1272_v48 = vpack.c.bf16 %v669_v42, %v668_v46  ;;  %v1296_v49 = vpack.c.bf16 %v756_v43, %v755_v47  ;;  %v1102_v50 = vpop.f32.mrb[16].mxu1  ;;  %v1142_v51 = vpop.f32.mrb[16].mxu0 }
 0x106   :  { %v671_v52 = vmul.f32 %v1102_v50, %v1623_v59  ;;  %v758_v53 = vmul.f32 %v1142_v51, %v1623_v59  ;;  %v478_v54 = vpop.f32.mrb[17].mxu1  ;;  %v623_v55 = vpop.f32.mrb[17].mxu0 }
 0x107   :  { %v670_v57 = vmul.f32 %v478_v54, %v1625_v61  ;;  %v757_v58 = vmul.f32 %v623_v55, %v1625_v61  ;;  %1273 = vmatpush3.bf16.msra.mxu1 %v1272_v48  ;;  %1297 = vmatpush3.bf16.msra.mxu0 %v1296_v49 }
 0x108   :  { %1274 = vmatprep.subr.bf16.mxu1 %v1345_v56  ;;  %1298 = vmatprep.subr.bf16.mxu0 %v1345_v56 }
 0x109   :  { %v1275_v60 = vpack.c.bf16 %v671_v52, %v670_v57  ;;  %v1299_v62 = vpack.c.bf16 %v758_v53, %v757_v58  ;;  %v1105_v0 = vpop.f32.mrb[18].mxu1  ;;  %v1145_v2 = vpop.f32.mrb[18].mxu0 }
 0x10a   :  { %v673_v4 = vmul.f32 %v1105_v0, %v1627_v63  ;;  %v760_v59 = vmul.f32 %v1145_v2, %v1627_v63  ;;  %v488_v6 = vpop.f32.mrb[19].mxu1  ;;  %v633_v8 = vpop.f32.mrb[19].mxu0 }
 0x10b   :  { %v672_v10 = vmul.f32 %v488_v6, %v1629_v1  ;;  %v759_v61 = vmul.f32 %v633_v8, %v1629_v1  ;;  %1276 = vmatpush3.bf16.msra.mxu1 %v1275_v60  ;;  %1300 = vmatpush3.bf16.msra.mxu0 %v1299_v62 }
 0x10c   :  { %1277 = vmatprep.subr.bf16.mxu1 %v1345_v56  ;;  %1301 = vmatprep.subr.bf16.mxu0 %v1345_v56 }
 0x10d   :  { %v1278_v11 = vpack.c.bf16 %v673_v4, %v672_v10  ;;  %v1302_v12 = vpack.c.bf16 %v760_v59, %v759_v61  ;;  %v1108_v13 = vpop.f32.mrb[20].mxu1  ;;  %v1148_v14 = vpop.f32.mrb[20].mxu0 }
 0x10e   :  { %v675_v15 = vmul.f32 %v1108_v13, %v1631_v3  ;;  %v762_v63 = vmul.f32 %v1148_v14, %v1631_v3  ;;  %v498_v16 = vpop.f32.mrb[21].mxu1  ;;  %v643_v17 = vpop.f32.mrb[21].mxu0 }
 0x10f   :  { %v674_v18 = vmul.f32 %v498_v16, %v1633_v5  ;;  %v761_v1 = vmul.f32 %v643_v17, %v1633_v5  ;;  %1279 = vmatpush3.bf16.msra.mxu1 %v1278_v11  ;;  %1303 = vmatpush3.bf16.msra.mxu0 %v1302_v12 }
 0x110   :  { %1280 = vmatprep.subr.bf16.mxu1 %v1345_v56  ;;  %1304 = vmatprep.subr.bf16.mxu0 %v1345_v56 }
 0x111   :  { %v1281_v19 = vpack.c.bf16 %v675_v15, %v674_v18  ;;  %v1305_v20 = vpack.c.bf16 %v762_v63, %v761_v1  ;;  %v1111_v21 = vpop.f32.mrb[22].mxu1  ;;  %v1151_v22 = vpop.f32.mrb[22].mxu0 }
 0x112   :  { %v677_v23 = vmul.f32 %v1111_v21, %v1635_v7  ;;  %v764_v3 = vmul.f32 %v1151_v22, %v1635_v7  ;;  %v508_v24 = vpop.f32.mrb[23].mxu1  ;;  %v653_v25 = vpop.f32.mrb[23].mxu0 }
 0x113   :  { %v676_v26 = vmul.f32 %v508_v24, %v1637_v9  ;;  %v763_v5 = vmul.f32 %v653_v25, %v1637_v9  ;;  %1282 = vmatpush3.bf16.msra.mxu1 %v1281_v19  ;;  %1306 = vmatpush3.bf16.msra.mxu0 %v1305_v20 }
 0x114   :  { %1283 = vmatprep.subr.bf16.mxu1 %v1345_v56  ;;  %1307 = vmatprep.subr.bf16.mxu0 %v1345_v56 }
 0x115   :  { %v1284_v27 = vpack.c.bf16 %v677_v23, %v676_v26  ;;  %v1308_v28 = vpack.c.bf16 %v764_v3, %v763_v5 }
 0x117   :  { %1285 = vmatpush3.bf16.msra.mxu1 %v1284_v27  ;;  %1309 = vmatpush3.bf16.msra.mxu0 %v1308_v28 }
 0x11a   :  { %1185 = vmatmul.mubr.f32.vlgmr.msra.gmra.mrb[24].mxu1 %v1348_v29  ;;  %1220 = vmatmul.mubr.f32.vlgmr.msra.gmra.mrb[24].mxu0 %v1348_v29 }
 0x1ed   :  { %v744_v7 = vpop.f32.mrb[24].mxu1  ;;  %v831_v30 = vpop.f32.mrb[24].mxu0 }
 0x1ee   :  { %748 = vst [vmem:[#allocation2] sm:$0x1] %v744_v7  ;;  %835 = vst [vmem:[#allocation2 + $0x1] sm:$0x1] %v831_v30  ;;  %v1186_v9 = vpop.f32.mrb[25].mxu1  ;;  %v1221_v31 = vpop.f32.mrb[25].mxu0 }
 0x1ef   :  { %1331 = shalt.err (!%p1328_p4)
}
 0x1f0   :  { %s1332_s23 = scalar_lea.hbm %s1684_s3, 32 }
 0x1f1   :  { %p1333_p5 = scmp.ne.s32.totalorder %s1684_s3, %s1332_s23  ;;  %p1336_p6 = scmp.lt.u32.totalorder %s1332_s23, %s1684_s3 }
 0x1f3   :  { %p1338_p7 = pnand %p1336_p6, %p1333_p5 }
 0x1f5   :  { %1341 = shalt.err (!%p1338_p7)
}
 0x1f6   :  { %845 = dma.vmem_to_hbm [thread:$0]  %s843_s19, 32, %s1684_s3, [#allocation3]  }
 0x1f7   :  { %1342 = dma.done.wait [#allocation3], 32  }
 0x1f8   :  { %1343 = vsyncadd [#allocation3], 4294967264 }
 0x1f9   :  { %849 = vsyncpa [#allocation3], 1 }

</bundles_post_ra>
